<compile_context>
chip_gen: v6e
topology: v6e:2x2x1
jax: 0.10.0
libtpu: 0.0.40
codegen_flags: <defaults>
</compile_context>

<pallas_src>
import math

import jax
import jax.numpy as jnp
from jax.experimental import pallas as pl
from jax.experimental.pallas import tpu as pltpu


# ----------------------------------------------------------------------------
# Fused Pallas kernel: get_repr (n_layers x 2 etypes) + gathers + cosine scores
# ----------------------------------------------------------------------------
def make_fused_forward_kernel(entry_dims):
    """Fused kernel body for a fixed (fully unrolled) number of layers.

    entry_dims: tuple of (k, d_out) per weight-slab entry, ordered
                [layer0 user->item, layer0 item->user, layer1 ..., ...]
    Inputs : adj_ui [Ni,Nu] bf16, h_user [Nu,Du] bf16, h_item [Ni,Di] bf16,
             idx [2, 2E] int32 (row0 = user ids pos|neg, row1 = item ids),
             w_slab [2L, Rmax, Cmax] bf16 (rows = [W_self; W_neigh; b_sum]).
    Outputs: h_user_out [Nu,Do] f32, h_item_out [Ni,Do] f32, scores [1, 2E] f32.
    """
    n_layers = len(entry_dims) // 2

    def kernel(adj_ref, hu_ref, hi_ref, idx_ref, w_ref,
               hu_out_ref, hi_out_ref, scores_ref):
        f32 = jnp.float32
        bf16 = jnp.bfloat16

        # ---- adjacency: one bf16 copy shipped; degree sums accumulated in f32.
        adj_f = adj_ref[...].astype(f32)                          # [Ni, Nu]
        deg_i = jnp.sum(adj_f, axis=1, keepdims=True)             # [Ni, 1]
        deg_u = jnp.sum(adj_f, axis=0, keepdims=True)             # [1, Nu]
        inv_i = pl.reciprocal(jnp.maximum(deg_i, 1.0), approx=True)   # EUP
        inv_u = pl.reciprocal(jnp.maximum(deg_u, 1.0), approx=True)
        # Mean-agg 1/deg folded into the adjacency ONCE and reused by every
        # layer; the item->user direction is a single in-kernel transpose
        # instead of a second HBM copy.
        adj_ui_n = (adj_f * inv_i).astype(bf16)                   # [Ni, Nu]
        adj_iu_n = jnp.transpose(adj_f * inv_u).astype(bf16)      # [Nu, Ni]

        hu = hu_ref[...].astype(f32)                              # [Nu, Du]
        hi = hi_ref[...].astype(f32)                              # [Ni, Di]

        def conv(adj_n_b, h_src_b, h_dst_f, w_entry, k, dout):
            # TODO(synk): SAGE-style ConvLayer assumed (source not in reference).
            neigh = jnp.dot(adj_n_b, h_src_b,
                            preferred_element_type=f32)           # mean agg
            # fused fc_self + fc_neigh: one MXU dot over the concatenated K.
            cat = jnp.concatenate([h_dst_f, neigh], axis=-1).astype(bf16)
            w = w_entry[:k, :dout]                                # [k, dout] bf16
            b = w_entry[k:k + 1, :dout].astype(f32)               # pre-summed bias
            z = jnp.dot(cat, w, preferred_element_type=f32) + b
            z = jnp.maximum(z, 0.0)                               # ReLU
            ss = jnp.sum(z * z, axis=-1, keepdims=True)
            return z * jax.lax.rsqrt(jnp.maximum(ss, 1e-24))      # row L2 norm

        for layer in range(n_layers):                             # unrolled
            hu_b = hu.astype(bf16)
            hi_b = hi.astype(bf16)
            k_i, do_i = entry_dims[2 * layer]                     # user->item
            k_u, do_u = entry_dims[2 * layer + 1]                 # item->user
            w_i = w_ref[2 * layer]                                # [Rmax, Cmax]
            w_u = w_ref[2 * layer + 1]
            new_hi = conv(adj_ui_n, hu_b, hi, w_i, k_i, do_i)     # dst = item
            new_hu = conv(adj_iu_n, hi_b, hu, w_u, k_u, do_u)     # dst = user
            hu, hi = new_hu, new_hi

        hu_out_ref[...] = hu
        hi_out_ref[...] = hi

        # ---- CosinePrediction (pos_g + neg_g fused), lane-dense [1, 2E] slab.
        nu = hu.shape[0]
        ni = hi.shape[0]
        two_e = idx_ref.shape[1]
        idx_u = idx_ref[0:1, :]                                   # [1, 2E]
        idx_i = idx_ref[1:2, :]
        # transposed one-hot gathers on the MXU, fused over pos+neg edges.
        # TODO(synk): out-of-range edge indices silently yield a zero embedding
        # (score 0) instead of failing like a real gather.
        sel_u = (jax.lax.broadcasted_iota(jnp.int32, (nu, two_e), 0)
                 == idx_u).astype(bf16)                           # [Nu, 2E]
        sel_i = (jax.lax.broadcasted_iota(jnp.int32, (ni, two_e), 0)
                 == idx_i).astype(bf16)                           # [Ni, 2E]
        gu = jnp.dot(hu.T.astype(bf16), sel_u,
                     preferred_element_type=f32)                  # [Do, 2E]
        gi = jnp.dot(hi.T.astype(bf16), sel_i,
                     preferred_element_type=f32)                  # [Do, 2E]
        # F.normalize(dim=-1) in f32 on the gathered columns (keeps |cos|<=1).
        gu = gu * jax.lax.rsqrt(
            jnp.maximum(jnp.sum(gu * gu, axis=0, keepdims=True), 1e-24))
        gi = gi * jax.lax.rsqrt(
            jnp.maximum(jnp.sum(gi * gi, axis=0, keepdims=True), 1e-24))
        # one lane-dense store: pos scores in lanes [0, E), neg in [E, 2E).
        scores_ref[...] = jnp.sum(gu * gi, axis=0, keepdims=True)

    return kernel


# ----------------------------------------------------------------------------
# Host-side packing helpers
# ----------------------------------------------------------------------------
def _pack_weight_slab(params):
    """Pack all layer weights into one padded bf16 slab [2L, Rmax, Cmax].

    Per entry rows = [W_self (d_dst); W_neigh (d_src); b_self + b_neigh].
    Returns (slab, entry_dims) with entry_dims[i] = (d_dst + d_src, d_out).
    """
    entries, dims = [], []
    for layer_p in params:
        for key in ('user->item', 'item->user'):
            p = layer_p[key]
            w_cat = jnp.concatenate([p['w_self'], p['w_neigh']], axis=0)
            b_sum = p['b_self'] + p['b_neigh']
            entries.append(jnp.concatenate([w_cat, b_sum], axis=0))
            dims.append((w_cat.shape[0], w_cat.shape[1]))
    rmax = max(e.shape[0] for e in entries)
    rmax = ((rmax + 7) // 8) * 8
    cmax = max(e.shape[1] for e in entries)
    padded = [jnp.pad(e, ((0, rmax - e.shape[0]), (0, cmax - e.shape[1])))
              for e in entries]
    slab = jnp.stack(padded).astype(jnp.bfloat16)
    return slab, tuple(dims)


def _vmem_limit_bytes(adj_bf, hu_bf, hi_bf, idx_slab, w_slab, d_out, e):
    f32, bf16 = 4, 2
    ni, nu = adj_bf.shape
    resident = (
        adj_bf.size * (bf16 + f32 + 2 * bf16)          # input + f32 temp + 2 norm copies
        + (hu_bf.size + hi_bf.size) * (bf16 + 2 * f32) # features + f32 activations
        + w_slab.size * bf16
        + idx_slab.size * 4
        + (nu + ni) * 2 * e * (4 + bf16)               # iota + one-hot selections
        + (nu + ni) * d_out * f32                      # outputs
        + 2 * e * f32 * 4)                             # gathered cols + scores
    return int(min(64 * 1024 * 1024, max(8 * 1024 * 1024, 4 * resident)))


# ----------------------------------------------------------------------------
# Wrapper: single pallas_call, everything VMEM-resident (no grid needed)
# ----------------------------------------------------------------------------
_VMEM = pl.BlockSpec(memory_space=pltpu.MemorySpace.VMEM)


def mpnn_forward(params, adj_ui, h_user, h_item, pos_edges, neg_edges):
    nu = h_user.shape[0]
    ni = h_item.shape[0]
    d_out = params[-1]['user->item']['w_self'].shape[1]
    e = pos_edges[0].shape[0]

    w_slab, entry_dims = _pack_weight_slab(params)

    idx_u = jnp.concatenate([jnp.asarray(pos_edges[0], jnp.int32),
                             jnp.asarray(neg_edges[0], jnp.int32)])
    idx_i = jnp.concatenate([jnp.asarray(pos_edges[1], jnp.int32),
                             jnp.asarray(neg_edges[1], jnp.int32)])
    idx_slab = jnp.stack([idx_u, idx_i])                 # [2, 2E] int32

    # host-side bf16 casts: 0/1 adjacency exact; features/weights per review.
    adj_bf = adj_ui.astype(jnp.bfloat16)
    hu_bf = h_user.astype(jnp.bfloat16)
    hi_bf = h_item.astype(jnp.bfloat16)

    hu_out, hi_out, scores = pl.pallas_call(
        make_fused_forward_kernel(entry_dims),
        out_shape=(jax.ShapeDtypeStruct((nu, d_out), jnp.float32),
                   jax.ShapeDtypeStruct((ni, d_out), jnp.float32),
                   jax.ShapeDtypeStruct((1, 2 * e), jnp.float32)),
        in_specs=[_VMEM] * 5,
        out_specs=(_VMEM, _VMEM, _VMEM),
        compiler_params=pltpu.CompilerParams(
            vmem_limit_bytes=_vmem_limit_bytes(
                adj_bf, hu_bf, hi_bf, idx_slab, w_slab, d_out, e)),
    )(adj_bf, hu_bf, hi_bf, idx_slab, w_slab)

    h = {'user': hu_out, 'item': hi_out}
    pos_score = scores[0, :e].reshape(e, 1)   # match DGL edata['cos'] shape [E, 1]
    neg_score = scores[0, e:].reshape(e, 1)
    return h, pos_score, neg_score


# ----------------------------------------------------------------------------
# Parameter construction (deterministic, PyTorch nn.Linear-style init)
# ----------------------------------------------------------------------------
def init_linear(key, din, dout):
    k_w, k_b = jax.random.split(key)
    bound = 1.0 / math.sqrt(din)
    w = jax.random.uniform(k_w, (din, dout), jnp.float32, -bound, bound)
    b = jax.random.uniform(k_b, (1, dout), jnp.float32, -bound, bound)
    return w, b


def init_conv_params(key, d_src, d_dst, d_out):
    k_s, k_n = jax.random.split(key)
    w_self, b_self = init_linear(k_s, d_dst, d_out)
    w_neigh, b_neigh = init_linear(k_n, d_src, d_out)
    return dict(w_self=w_self, b_self=b_self, w_neigh=w_neigh, b_neigh=b_neigh)


def init_model_params(key, dim_dict, n_layers=3):
    du, di, dh, do = (dim_dict['user'], dim_dict['item'],
                      dim_dict['hidden'], dim_dict['out'])
    params = []
    keys = jax.random.split(key, 2 * n_layers)
    # layer 0: (src_dim, dst_dim) -> hidden
    params.append({
        'user->item': init_conv_params(keys[0], du, di, dh),
        'item->user': init_conv_params(keys[1], di, du, dh),
    })
    # middle layers: hidden -> hidden
    for i in range(n_layers - 2):
        params.append({
            'user->item': init_conv_params(keys[2 + 2 * i], dh, dh, dh),
            'item->user': init_conv_params(keys[3 + 2 * i], dh, dh, dh),
        })
    # last layer: hidden -> out
    params.append({
        'user->item': init_conv_params(keys[-2], dh, dh, do),
        'item->user': init_conv_params(keys[-1], dh, dh, do),
    })
    return params


# ----------------------------------------------------------------------------
if __name__ == "__main__":
    key = jax.random.PRNGKey(0)
    k_params, k_adj, k_hu, k_hi, k_pe, k_ne = jax.random.split(key, 6)

    dim_dict = {'user': 8, 'item': 16, 'hidden': 32, 'out': 16}
    n_users, n_items = 16, 16
    n_edges = 32
    n_layers = 3

    params = init_model_params(k_params, dim_dict, n_layers=n_layers)

    # dense bipartite adjacency (same block graph reused for every layer)
    adj_ui = (jax.random.uniform(k_adj, (n_items, n_users)) < 0.3
              ).astype(jnp.float32)                 # item <- user edges

    h_user = jax.random.normal(k_hu, (n_users, dim_dict['user']), jnp.float32)
    h_item = jax.random.normal(k_hi, (n_items, dim_dict['item']), jnp.float32)

    pos_edges = (jax.random.randint(k_pe, (n_edges,), 0, n_users),
                 jax.random.randint(jax.random.fold_in(k_pe, 1),
                                    (n_edges,), 0, n_items))
    neg_edges = (jax.random.randint(k_ne, (n_edges,), 0, n_users),
                 jax.random.randint(jax.random.fold_in(k_ne, 1),
                                    (n_edges,), 0, n_items))

    h, pos_score, neg_score = mpnn_forward(
        params, adj_ui, h_user, h_item, pos_edges, neg_edges)

    jax.block_until_ready((h, pos_score, neg_score))

    assert h['user'].shape == (n_users, dim_dict['out'])
    assert h['item'].shape == (n_items, dim_dict['out'])
    assert pos_score.shape == (n_edges, 1)
    assert neg_score.shape == (n_edges, 1)
    assert bool(jnp.all(jnp.isfinite(h['user'])))
    assert bool(jnp.all(jnp.isfinite(h['item'])))
    assert bool(jnp.all(jnp.isfinite(pos_score)))
    assert bool(jnp.all(jnp.isfinite(neg_score)))
    assert bool(jnp.all(jnp.abs(pos_score) <= 1.0 + 1e-5))
    assert bool(jnp.all(jnp.abs(neg_score) <= 1.0 + 1e-5))

    print("KERNEL_OK")
</pallas_src>

<mosaic_0001>
module attributes {stable_mosaic.version = 11 : i64} {
  func.func @kernel(%arg0: memref<16x16xbf16, #tpu.memory_space<vmem>>, %arg1: memref<16x8xbf16, #tpu.memory_space<vmem>>, %arg2: memref<16x16xbf16, #tpu.memory_space<vmem>>, %arg3: memref<2x64xi32, #tpu.memory_space<vmem>>, %arg4: memref<6x72x32xbf16, #tpu.memory_space<vmem>>, %arg5: memref<16x16xf32, #tpu.memory_space<vmem>>, %arg6: memref<16x16xf32, #tpu.memory_space<vmem>>, %arg7: memref<1x64xf32, #tpu.memory_space<vmem>>) attributes {dimension_semantics = [], scalar_prefetch = 0 : i64, scratch_operands = 0 : i64, tpu.core_type = #tpu.core_type<tc>} {
    %c0 = arith.constant 0 : index
    %c0_0 = arith.constant 0 : index
    %0 = vector.load %arg0[%c0, %c0_0] : memref<16x16xbf16, #tpu.memory_space<vmem>>, vector<16x16xbf16>
    %1 = arith.extf %0 : vector<16x16xbf16> to vector<16x16xf32>
    %cst = arith.constant dense<0.000000e+00> : vector<16xf32>
    %2 = vector.multi_reduction <add>, %1, %cst [1] : vector<16x16xf32> to vector<16xf32>
    %3 = vector.shape_cast %2 : vector<16xf32> to vector<16x1xf32>
    %cst_1 = arith.constant dense<0.000000e+00> : vector<16xf32>
    %4 = vector.multi_reduction <add>, %1, %cst_1 [0] : vector<16x16xf32> to vector<16xf32>
    %5 = vector.shape_cast %4 : vector<16xf32> to vector<1x16xf32>
    %cst_2 = arith.constant 1.000000e+00 : f32
    %6 = vector.broadcast %cst_2 : f32 to vector<16x1xf32>
    %7 = arith.maximumf %3, %6 : vector<16x1xf32>
    %8 = tpu.reciprocal %7 {approx = true} : vector<16x1xf32> -> vector<16x1xf32>
    %cst_3 = arith.constant 1.000000e+00 : f32
    %9 = vector.broadcast %cst_3 : f32 to vector<1x16xf32>
    %10 = arith.maximumf %5, %9 : vector<1x16xf32>
    %11 = tpu.reciprocal %10 {approx = true} : vector<1x16xf32> -> vector<1x16xf32>
    %12 = vector.broadcast %8 : vector<16x1xf32> to vector<16x16xf32>
    %13 = arith.mulf %1, %12 : vector<16x16xf32>
    %14 = arith.truncf %13 : vector<16x16xf32> to vector<16x16xbf16>
    %15 = vector.broadcast %11 : vector<1x16xf32> to vector<16x16xf32>
    %16 = arith.mulf %1, %15 : vector<16x16xf32>
    %17 = tpu.transpose %16, [1, 0] : vector<16x16xf32> -> vector<16x16xf32>
    %18 = arith.truncf %17 : vector<16x16xf32> to vector<16x16xbf16>
    %c0_4 = arith.constant 0 : index
    %c0_5 = arith.constant 0 : index
    %19 = vector.load %arg1[%c0_4, %c0_5] : memref<16x8xbf16, #tpu.memory_space<vmem>>, vector<16x8xbf16>
    %20 = arith.extf %19 : vector<16x8xbf16> to vector<16x8xf32>
    %c0_6 = arith.constant 0 : index
    %c0_7 = arith.constant 0 : index
    %21 = vector.load %arg2[%c0_6, %c0_7] : memref<16x16xbf16, #tpu.memory_space<vmem>>, vector<16x16xbf16>
    %22 = arith.extf %21 : vector<16x16xbf16> to vector<16x16xf32>
    %23 = arith.truncf %20 : vector<16x8xf32> to vector<16x8xbf16>
    %24 = arith.truncf %22 : vector<16x16xf32> to vector<16x16xbf16>
    %c0_8 = arith.constant 0 : index
    %c0_9 = arith.constant 0 : index
    %c0_10 = arith.constant 0 : index
    %25 = vector.load %arg4[%c0_8, %c0_9, %c0_10] : memref<6x72x32xbf16, #tpu.memory_space<vmem>>, vector<1x72x32xbf16>
    %26 = vector.shape_cast %25 : vector<1x72x32xbf16> to vector<72x32xbf16>
    %c1 = arith.constant 1 : index
    %c0_11 = arith.constant 0 : index
    %c0_12 = arith.constant 0 : index
    %27 = vector.load %arg4[%c1, %c0_11, %c0_12] : memref<6x72x32xbf16, #tpu.memory_space<vmem>>, vector<1x72x32xbf16>
    %28 = vector.shape_cast %27 : vector<1x72x32xbf16> to vector<72x32xbf16>
    %cst_13 = arith.constant dense<0.000000e+00> : vector<16x8xf32>
    %29 = tpu.matmul %14, %23, %cst_13 {dimension_numbers = #tpu.dot_dimension_numbers<[1], [0], [0], [1], [0, 0, 1, 1], [], []>} : vector<16x16xbf16>, vector<16x8xbf16>, vector<16x8xf32> -> vector<16x8xf32>
    %30 = tpu.concatenate %22, %29 in 1 : vector<16x16xf32>, vector<16x8xf32> -> vector<16x24xf32>
    %31 = arith.truncf %30 : vector<16x24xf32> to vector<16x24xbf16>
    %32 = vector.extract_strided_slice %26 {offsets = [0, 0], sizes = [24, 32], strides = [1, 1]} : vector<72x32xbf16> to vector<24x32xbf16>
    %33 = vector.extract_strided_slice %26 {offsets = [24, 0], sizes = [1, 32], strides = [1, 1]} : vector<72x32xbf16> to vector<1x32xbf16>
    %34 = arith.extf %33 : vector<1x32xbf16> to vector<1x32xf32>
    %cst_14 = arith.constant dense<0.000000e+00> : vector<16x32xf32>
    %35 = tpu.matmul %31, %32, %cst_14 {dimension_numbers = #tpu.dot_dimension_numbers<[1], [0], [0], [1], [0, 0, 1, 1], [], []>} : vector<16x24xbf16>, vector<24x32xbf16>, vector<16x32xf32> -> vector<16x32xf32>
    %36 = vector.broadcast %34 : vector<1x32xf32> to vector<16x32xf32>
    %37 = arith.addf %35, %36 : vector<16x32xf32>
    %cst_15 = arith.constant 0.000000e+00 : f32
    %38 = vector.broadcast %cst_15 : f32 to vector<16x32xf32>
    %39 = arith.maximumf %37, %38 : vector<16x32xf32>
    %40 = arith.mulf %39, %39 : vector<16x32xf32>
    %cst_16 = arith.constant dense<0.000000e+00> : vector<16xf32>
    %41 = vector.multi_reduction <add>, %40, %cst_16 [1] : vector<16x32xf32> to vector<16xf32>
    %42 = vector.shape_cast %41 : vector<16xf32> to vector<16x1xf32>
    %cst_17 = arith.constant 1.000000e-24 : f32
    %43 = vector.broadcast %cst_17 : f32 to vector<16x1xf32>
    %44 = arith.maximumf %42, %43 : vector<16x1xf32>
    %45 = math.rsqrt %44 : vector<16x1xf32>
    %46 = vector.broadcast %45 : vector<16x1xf32> to vector<16x32xf32>
    %47 = arith.mulf %39, %46 : vector<16x32xf32>
    %cst_18 = arith.constant dense<0.000000e+00> : vector<16x16xf32>
    %48 = tpu.matmul %18, %24, %cst_18 {dimension_numbers = #tpu.dot_dimension_numbers<[1], [0], [0], [1], [0, 0, 1, 1], [], []>} : vector<16x16xbf16>, vector<16x16xbf16>, vector<16x16xf32> -> vector<16x16xf32>
    %49 = tpu.concatenate %20, %48 in 1 : vector<16x8xf32>, vector<16x16xf32> -> vector<16x24xf32>
    %50 = arith.truncf %49 : vector<16x24xf32> to vector<16x24xbf16>
    %51 = vector.extract_strided_slice %28 {offsets = [0, 0], sizes = [24, 32], strides = [1, 1]} : vector<72x32xbf16> to vector<24x32xbf16>
    %52 = vector.extract_strided_slice %28 {offsets = [24, 0], sizes = [1, 32], strides = [1, 1]} : vector<72x32xbf16> to vector<1x32xbf16>
    %53 = arith.extf %52 : vector<1x32xbf16> to vector<1x32xf32>
    %cst_19 = arith.constant dense<0.000000e+00> : vector<16x32xf32>
    %54 = tpu.matmul %50, %51, %cst_19 {dimension_numbers = #tpu.dot_dimension_numbers<[1], [0], [0], [1], [0, 0, 1, 1], [], []>} : vector<16x24xbf16>, vector<24x32xbf16>, vector<16x32xf32> -> vector<16x32xf32>
    %55 = vector.broadcast %53 : vector<1x32xf32> to vector<16x32xf32>
    %56 = arith.addf %54, %55 : vector<16x32xf32>
    %cst_20 = arith.constant 0.000000e+00 : f32
    %57 = vector.broadcast %cst_20 : f32 to vector<16x32xf32>
    %58 = arith.maximumf %56, %57 : vector<16x32xf32>
    %59 = arith.mulf %58, %58 : vector<16x32xf32>
    %cst_21 = arith.constant dense<0.000000e+00> : vector<16xf32>
    %60 = vector.multi_reduction <add>, %59, %cst_21 [1] : vector<16x32xf32> to vector<16xf32>
    %61 = vector.shape_cast %60 : vector<16xf32> to vector<16x1xf32>
    %cst_22 = arith.constant 1.000000e-24 : f32
    %62 = vector.broadcast %cst_22 : f32 to vector<16x1xf32>
    %63 = arith.maximumf %61, %62 : vector<16x1xf32>
    %64 = math.rsqrt %63 : vector<16x1xf32>
    %65 = vector.broadcast %64 : vector<16x1xf32> to vector<16x32xf32>
    %66 = arith.mulf %58, %65 : vector<16x32xf32>
    %67 = arith.truncf %66 : vector<16x32xf32> to vector<16x32xbf16>
    %68 = arith.truncf %47 : vector<16x32xf32> to vector<16x32xbf16>
    %c2 = arith.constant 2 : index
    %c0_23 = arith.constant 0 : index
    %c0_24 = arith.constant 0 : index
    %69 = vector.load %arg4[%c2, %c0_23, %c0_24] : memref<6x72x32xbf16, #tpu.memory_space<vmem>>, vector<1x72x32xbf16>
    %70 = vector.shape_cast %69 : vector<1x72x32xbf16> to vector<72x32xbf16>
    %c3 = arith.constant 3 : index
    %c0_25 = arith.constant 0 : index
    %c0_26 = arith.constant 0 : index
    %71 = vector.load %arg4[%c3, %c0_25, %c0_26] : memref<6x72x32xbf16, #tpu.memory_space<vmem>>, vector<1x72x32xbf16>
    %72 = vector.shape_cast %71 : vector<1x72x32xbf16> to vector<72x32xbf16>
    %cst_27 = arith.constant dense<0.000000e+00> : vector<16x32xf32>
    %73 = tpu.matmul %14, %67, %cst_27 {dimension_numbers = #tpu.dot_dimension_numbers<[1], [0], [0], [1], [0, 0, 1, 1], [], []>} : vector<16x16xbf16>, vector<16x32xbf16>, vector<16x32xf32> -> vector<16x32xf32>
    %74 = tpu.concatenate %47, %73 in 1 : vector<16x32xf32>, vector<16x32xf32> -> vector<16x64xf32>
    %75 = arith.truncf %74 : vector<16x64xf32> to vector<16x64xbf16>
    %76 = vector.extract_strided_slice %70 {offsets = [0, 0], sizes = [64, 32], strides = [1, 1]} : vector<72x32xbf16> to vector<64x32xbf16>
    %77 = vector.extract_strided_slice %70 {offsets = [64, 0], sizes = [1, 32], strides = [1, 1]} : vector<72x32xbf16> to vector<1x32xbf16>
    %78 = arith.extf %77 : vector<1x32xbf16> to vector<1x32xf32>
    %cst_28 = arith.constant dense<0.000000e+00> : vector<16x32xf32>
    %79 = tpu.matmul %75, %76, %cst_28 {dimension_numbers = #tpu.dot_dimension_numbers<[1], [0], [0], [1], [0, 0, 1, 1], [], []>} : vector<16x64xbf16>, vector<64x32xbf16>, vector<16x32xf32> -> vector<16x32xf32>
    %80 = vector.broadcast %78 : vector<1x32xf32> to vector<16x32xf32>
    %81 = arith.addf %79, %80 : vector<16x32xf32>
    %cst_29 = arith.constant 0.000000e+00 : f32
    %82 = vector.broadcast %cst_29 : f32 to vector<16x32xf32>
    %83 = arith.maximumf %81, %82 : vector<16x32xf32>
    %84 = arith.mulf %83, %83 : vector<16x32xf32>
    %cst_30 = arith.constant dense<0.000000e+00> : vector<16xf32>
    %85 = vector.multi_reduction <add>, %84, %cst_30 [1] : vector<16x32xf32> to vector<16xf32>
    %86 = vector.shape_cast %85 : vector<16xf32> to vector<16x1xf32>
    %cst_31 = arith.constant 1.000000e-24 : f32
    %87 = vector.broadcast %cst_31 : f32 to vector<16x1xf32>
    %88 = arith.maximumf %86, %87 : vector<16x1xf32>
    %89 = math.rsqrt %88 : vector<16x1xf32>
    %90 = vector.broadcast %89 : vector<16x1xf32> to vector<16x32xf32>
    %91 = arith.mulf %83, %90 : vector<16x32xf32>
    %cst_32 = arith.constant dense<0.000000e+00> : vector<16x32xf32>
    %92 = tpu.matmul %18, %68, %cst_32 {dimension_numbers = #tpu.dot_dimension_numbers<[1], [0], [0], [1], [0, 0, 1, 1], [], []>} : vector<16x16xbf16>, vector<16x32xbf16>, vector<16x32xf32> -> vector<16x32xf32>
    %93 = tpu.concatenate %66, %92 in 1 : vector<16x32xf32>, vector<16x32xf32> -> vector<16x64xf32>
    %94 = arith.truncf %93 : vector<16x64xf32> to vector<16x64xbf16>
    %95 = vector.extract_strided_slice %72 {offsets = [0, 0], sizes = [64, 32], strides = [1, 1]} : vector<72x32xbf16> to vector<64x32xbf16>
    %96 = vector.extract_strided_slice %72 {offsets = [64, 0], sizes = [1, 32], strides = [1, 1]} : vector<72x32xbf16> to vector<1x32xbf16>
    %97 = arith.extf %96 : vector<1x32xbf16> to vector<1x32xf32>
    %cst_33 = arith.constant dense<0.000000e+00> : vector<16x32xf32>
    %98 = tpu.matmul %94, %95, %cst_33 {dimension_numbers = #tpu.dot_dimension_numbers<[1], [0], [0], [1], [0, 0, 1, 1], [], []>} : vector<16x64xbf16>, vector<64x32xbf16>, vector<16x32xf32> -> vector<16x32xf32>
    %99 = vector.broadcast %97 : vector<1x32xf32> to vector<16x32xf32>
    %100 = arith.addf %98, %99 : vector<16x32xf32>
    %cst_34 = arith.constant 0.000000e+00 : f32
    %101 = vector.broadcast %cst_34 : f32 to vector<16x32xf32>
    %102 = arith.maximumf %100, %101 : vector<16x32xf32>
    %103 = arith.mulf %102, %102 : vector<16x32xf32>
    %cst_35 = arith.constant dense<0.000000e+00> : vector<16xf32>
    %104 = vector.multi_reduction <add>, %103, %cst_35 [1] : vector<16x32xf32> to vector<16xf32>
    %105 = vector.shape_cast %104 : vector<16xf32> to vector<16x1xf32>
    %cst_36 = arith.constant 1.000000e-24 : f32
    %106 = vector.broadcast %cst_36 : f32 to vector<16x1xf32>
    %107 = arith.maximumf %105, %106 : vector<16x1xf32>
    %108 = math.rsqrt %107 : vector<16x1xf32>
    %109 = vector.broadcast %108 : vector<16x1xf32> to vector<16x32xf32>
    %110 = arith.mulf %102, %109 : vector<16x32xf32>
    %111 = arith.truncf %110 : vector<16x32xf32> to vector<16x32xbf16>
    %112 = arith.truncf %91 : vector<16x32xf32> to vector<16x32xbf16>
    %c4 = arith.constant 4 : index
    %c0_37 = arith.constant 0 : index
    %c0_38 = arith.constant 0 : index
    %113 = vector.load %arg4[%c4, %c0_37, %c0_38] : memref<6x72x32xbf16, #tpu.memory_space<vmem>>, vector<1x72x32xbf16>
    %114 = vector.shape_cast %113 : vector<1x72x32xbf16> to vector<72x32xbf16>
    %c5 = arith.constant 5 : index
    %c0_39 = arith.constant 0 : index
    %c0_40 = arith.constant 0 : index
    %115 = vector.load %arg4[%c5, %c0_39, %c0_40] : memref<6x72x32xbf16, #tpu.memory_space<vmem>>, vector<1x72x32xbf16>
    %116 = vector.shape_cast %115 : vector<1x72x32xbf16> to vector<72x32xbf16>
    %cst_41 = arith.constant dense<0.000000e+00> : vector<16x32xf32>
    %117 = tpu.matmul %14, %111, %cst_41 {dimension_numbers = #tpu.dot_dimension_numbers<[1], [0], [0], [1], [0, 0, 1, 1], [], []>} : vector<16x16xbf16>, vector<16x32xbf16>, vector<16x32xf32> -> vector<16x32xf32>
    %118 = tpu.concatenate %91, %117 in 1 : vector<16x32xf32>, vector<16x32xf32> -> vector<16x64xf32>
    %119 = arith.truncf %118 : vector<16x64xf32> to vector<16x64xbf16>
    %120 = vector.extract_strided_slice %114 {offsets = [0, 0], sizes = [64, 16], strides = [1, 1]} : vector<72x32xbf16> to vector<64x16xbf16>
    %121 = vector.extract_strided_slice %114 {offsets = [64, 0], sizes = [1, 16], strides = [1, 1]} : vector<72x32xbf16> to vector<1x16xbf16>
    %122 = arith.extf %121 : vector<1x16xbf16> to vector<1x16xf32>
    %cst_42 = arith.constant dense<0.000000e+00> : vector<16x16xf32>
    %123 = tpu.matmul %119, %120, %cst_42 {dimension_numbers = #tpu.dot_dimension_numbers<[1], [0], [0], [1], [0, 0, 1, 1], [], []>} : vector<16x64xbf16>, vector<64x16xbf16>, vector<16x16xf32> -> vector<16x16xf32>
    %124 = vector.broadcast %122 : vector<1x16xf32> to vector<16x16xf32>
    %125 = arith.addf %123, %124 : vector<16x16xf32>
    %cst_43 = arith.constant 0.000000e+00 : f32
    %126 = vector.broadcast %cst_43 : f32 to vector<16x16xf32>
    %127 = arith.maximumf %125, %126 : vector<16x16xf32>
    %128 = arith.mulf %127, %127 : vector<16x16xf32>
    %cst_44 = arith.constant dense<0.000000e+00> : vector<16xf32>
    %129 = vector.multi_reduction <add>, %128, %cst_44 [1] : vector<16x16xf32> to vector<16xf32>
    %130 = vector.shape_cast %129 : vector<16xf32> to vector<16x1xf32>
    %cst_45 = arith.constant 1.000000e-24 : f32
    %131 = vector.broadcast %cst_45 : f32 to vector<16x1xf32>
    %132 = arith.maximumf %130, %131 : vector<16x1xf32>
    %133 = math.rsqrt %132 : vector<16x1xf32>
    %134 = vector.broadcast %133 : vector<16x1xf32> to vector<16x16xf32>
    %135 = arith.mulf %127, %134 : vector<16x16xf32>
    %cst_46 = arith.constant dense<0.000000e+00> : vector<16x32xf32>
    %136 = tpu.matmul %18, %112, %cst_46 {dimension_numbers = #tpu.dot_dimension_numbers<[1], [0], [0], [1], [0, 0, 1, 1], [], []>} : vector<16x16xbf16>, vector<16x32xbf16>, vector<16x32xf32> -> vector<16x32xf32>
    %137 = tpu.concatenate %110, %136 in 1 : vector<16x32xf32>, vector<16x32xf32> -> vector<16x64xf32>
    %138 = arith.truncf %137 : vector<16x64xf32> to vector<16x64xbf16>
    %139 = vector.extract_strided_slice %116 {offsets = [0, 0], sizes = [64, 16], strides = [1, 1]} : vector<72x32xbf16> to vector<64x16xbf16>
    %140 = vector.extract_strided_slice %116 {offsets = [64, 0], sizes = [1, 16], strides = [1, 1]} : vector<72x32xbf16> to vector<1x16xbf16>
    %141 = arith.extf %140 : vector<1x16xbf16> to vector<1x16xf32>
    %cst_47 = arith.constant dense<0.000000e+00> : vector<16x16xf32>
    %142 = tpu.matmul %138, %139, %cst_47 {dimension_numbers = #tpu.dot_dimension_numbers<[1], [0], [0], [1], [0, 0, 1, 1], [], []>} : vector<16x64xbf16>, vector<64x16xbf16>, vector<16x16xf32> -> vector<16x16xf32>
    %143 = vector.broadcast %141 : vector<1x16xf32> to vector<16x16xf32>
    %144 = arith.addf %142, %143 : vector<16x16xf32>
    %cst_48 = arith.constant 0.000000e+00 : f32
    %145 = vector.broadcast %cst_48 : f32 to vector<16x16xf32>
    %146 = arith.maximumf %144, %145 : vector<16x16xf32>
    %147 = arith.mulf %146, %146 : vector<16x16xf32>
    %cst_49 = arith.constant dense<0.000000e+00> : vector<16xf32>
    %148 = vector.multi_reduction <add>, %147, %cst_49 [1] : vector<16x16xf32> to vector<16xf32>
    %149 = vector.shape_cast %148 : vector<16xf32> to vector<16x1xf32>
    %cst_50 = arith.constant 1.000000e-24 : f32
    %150 = vector.broadcast %cst_50 : f32 to vector<16x1xf32>
    %151 = arith.maximumf %149, %150 : vector<16x1xf32>
    %152 = math.rsqrt %151 : vector<16x1xf32>
    %153 = vector.broadcast %152 : vector<16x1xf32> to vector<16x16xf32>
    %154 = arith.mulf %146, %153 : vector<16x16xf32>
    %c0_51 = arith.constant 0 : index
    %c0_52 = arith.constant 0 : index
    %155 = vector.load %arg5[%c0_51, %c0_52] : memref<16x16xf32, #tpu.memory_space<vmem>>, vector<16x16xf32>
    tpu.vector_store %arg5[%c0_51, %c0_52], %154 {strides = array<i32>} : memref<16x16xf32, #tpu.memory_space<vmem>>, vector<16x16xf32>,
    %c0_53 = arith.constant 0 : index
    %c0_54 = arith.constant 0 : index
    %156 = vector.load %arg6[%c0_53, %c0_54] : memref<16x16xf32, #tpu.memory_space<vmem>>, vector<16x16xf32>
    tpu.vector_store %arg6[%c0_53, %c0_54], %135 {strides = array<i32>} : memref<16x16xf32, #tpu.memory_space<vmem>>, vector<16x16xf32>,
    %c0_55 = arith.constant 0 : index
    %c0_56 = arith.constant 0 : index
    %157 = vector.load %arg3[%c0_55, %c0_56] : memref<2x64xi32, #tpu.memory_space<vmem>>, vector<1x64xi32>
    %c1_57 = arith.constant 1 : index
    %c0_58 = arith.constant 0 : index
    %158 = vector.load %arg3[%c1_57, %c0_58] : memref<2x64xi32, #tpu.memory_space<vmem>>, vector<1x64xi32>
    %159 = tpu.iota {dimensions = array<i32: 0>} : vector<16x64xi32>
    %160 = vector.broadcast %157 : vector<1x64xi32> to vector<16x64xi32>
    %161 = arith.cmpi eq, %159, %160 : vector<16x64xi32>
    %162 = arith.extui %161 : vector<16x64xi1> to vector<16x64xi32>
    %163 = arith.sitofp %162 : vector<16x64xi32> to vector<16x64xf32>
    %164 = arith.truncf %163 : vector<16x64xf32> to vector<16x64xbf16>
    %165 = tpu.iota {dimensions = array<i32: 0>} : vector<16x64xi32>
    %166 = vector.broadcast %158 : vector<1x64xi32> to vector<16x64xi32>
    %167 = arith.cmpi eq, %165, %166 : vector<16x64xi32>
    %168 = arith.extui %167 : vector<16x64xi1> to vector<16x64xi32>
    %169 = arith.sitofp %168 : vector<16x64xi32> to vector<16x64xf32>
    %170 = arith.truncf %169 : vector<16x64xf32> to vector<16x64xbf16>
    %171 = tpu.transpose %154, [1, 0] : vector<16x16xf32> -> vector<16x16xf32>
    %172 = arith.truncf %171 : vector<16x16xf32> to vector<16x16xbf16>
    %cst_59 = arith.constant dense<0.000000e+00> : vector<16x64xf32>
    %173 = tpu.matmul %172, %164, %cst_59 {dimension_numbers = #tpu.dot_dimension_numbers<[1], [0], [0], [1], [0, 0, 1, 1], [], []>} : vector<16x16xbf16>, vector<16x64xbf16>, vector<16x64xf32> -> vector<16x64xf32>
    %174 = tpu.transpose %135, [1, 0] : vector<16x16xf32> -> vector<16x16xf32>
    %175 = arith.truncf %174 : vector<16x16xf32> to vector<16x16xbf16>
    %cst_60 = arith.constant dense<0.000000e+00> : vector<16x64xf32>
    %176 = tpu.matmul %175, %170, %cst_60 {dimension_numbers = #tpu.dot_dimension_numbers<[1], [0], [0], [1], [0, 0, 1, 1], [], []>} : vector<16x16xbf16>, vector<16x64xbf16>, vector<16x64xf32> -> vector<16x64xf32>
    %177 = arith.mulf %173, %173 : vector<16x64xf32>
    %cst_61 = arith.constant dense<0.000000e+00> : vector<64xf32>
    %178 = vector.multi_reduction <add>, %177, %cst_61 [0] : vector<16x64xf32> to vector<64xf32>
    %179 = vector.shape_cast %178 : vector<64xf32> to vector<1x64xf32>
    %cst_62 = arith.constant 1.000000e-24 : f32
    %180 = vector.broadcast %cst_62 : f32 to vector<1x64xf32>
    %181 = arith.maximumf %179, %180 : vector<1x64xf32>
    %182 = math.rsqrt %181 : vector<1x64xf32>
    %183 = vector.broadcast %182 : vector<1x64xf32> to vector<16x64xf32>
    %184 = arith.mulf %173, %183 : vector<16x64xf32>
    %185 = arith.mulf %176, %176 : vector<16x64xf32>
    %cst_63 = arith.constant dense<0.000000e+00> : vector<64xf32>
    %186 = vector.multi_reduction <add>, %185, %cst_63 [0] : vector<16x64xf32> to vector<64xf32>
    %187 = vector.shape_cast %186 : vector<64xf32> to vector<1x64xf32>
    %cst_64 = arith.constant 1.000000e-24 : f32
    %188 = vector.broadcast %cst_64 : f32 to vector<1x64xf32>
    %189 = arith.maximumf %187, %188 : vector<1x64xf32>
    %190 = math.rsqrt %189 : vector<1x64xf32>
    %191 = vector.broadcast %190 : vector<1x64xf32> to vector<16x64xf32>
    %192 = arith.mulf %176, %191 : vector<16x64xf32>
    %193 = arith.mulf %184, %192 : vector<16x64xf32>
    %cst_65 = arith.constant dense<0.000000e+00> : vector<64xf32>
    %194 = vector.multi_reduction <add>, %193, %cst_65 [0] : vector<16x64xf32> to vector<64xf32>
    %195 = vector.shape_cast %194 : vector<64xf32> to vector<1x64xf32>
    %c0_66 = arith.constant 0 : index
    %c0_67 = arith.constant 0 : index
    %196 = vector.load %arg7[%c0_66, %c0_67] : memref<1x64xf32, #tpu.memory_space<vmem>>, vector<1x64xf32>
    tpu.vector_store %arg7[%c0_66, %c0_67], %195 {strides = array<i32>} : memref<1x64xf32, #tpu.memory_space<vmem>>, vector<1x64xf32>,
    return
  }
}

</mosaic_0001>

<bundles_post_ra>
// kernel: tpu_custom_call.1
= control target key start
LH: loop header
LB: loop body
LE: loop exit
PB: predicated region body
PF: predicated region fallthrough
CT: control target
= control target key end

     0   :  { %13 = vsyncpa [#allocation3], 0  ;;  %vm30_vm0 = vcmask 130048   ;;  %s1970_s0 = inlined_call_operand.vmem [shape: bf16[16,16], index: 0, kind: input, shape index: {}]   ;;  %s1971_s1 = inlined_call_operand.vmem [shape: bf16[16,8], index: 1, kind: input, shape index: {}]   ;;  %s1972_s2 = inlined_call_operand.vmem [shape: bf16[16,16], index: 2, kind: input, shape index: {}]   ;;  %s1973_s3 = inlined_call_operand.vmem [shape: s32[2,64], index: 3, kind: input, shape index: {}]   ;;  %s1974_s4 = inlined_call_operand.vmem [shape: bf16[6,72,32], index: 4, kind: input, shape index: {}]   ;;  %s1975_s5 = inlined_call_operand.hbm [shape: f32[16,16], index: 5, kind: output, shape index: {0}]   ;;  %s1976_s6 = inlined_call_operand.hbm [shape: f32[16,16], index: 6, kind: output, shape index: {1}]   ;;  %s1977_s7 = inlined_call_operand.hbm [shape: f32[1,64], index: 7, kind: output, shape index: {2}]  }
   0x1   :  { %v1354_v0 = vld [vmem:[%s1970_s0] sm:$0xff]  }
   0x2   :  { %v1355_v1 = vunpack.c.l.bf16 %v1354_v0  ;;  %v1356_v2 = vunpack.c.h.bf16 %v1354_v0 }
   0x4   :  { %v31_v3 = vsel %vm30_vm0, %v1355_v1, 0.0  ;;  %v34_v4 = vsel %vm30_vm0, %v1356_v2, 0.0 }
   0x5   :  { %32 = vadd.xlane.f32.xlu0 %v31_v3  ;;  %v37_v5 = vadd.f32 %v34_v4, %v31_v3 }
   0x7   :  { %v38_v6 = vrot.slane %v37_v5, 4 }
   0x9   :  { %35 = vadd.xlane.f32.xlu0 %v34_v4  ;;  %v39_v7 = vadd.f32 %v38_v6, %v37_v5 }
   0xb   :  { %v40_v8 = vrot.slane %v39_v7, 2 }
   0xd   :  { %v41_v9 = vadd.f32 %v40_v8, %v39_v7 }
   0xf   :  { %v42_v10 = vrot.slane %v41_v9, 1 }
  0x10   :  { %14 = vsyncpa [#allocation5], 0  ;;  %v1731_v13 = vld [vmem:[%s1971_s1] sm:$0xff]   ;;  %v1673_v14 = vmov 0.0   ;;  %vm1674_vm1 = vmmov 0   ;;  %vm184_vm2 = vcmask 1043456   ;;  %v167_v63 = vlaneseq }
  0x11   :  { %v43_v11 = vadd.f32 %v42_v10, %v41_v9  ;;  %1399 = vmatprep.subr.bf16.mxu0 %v1673_v14  ;;  %1405 = vmatprep.subr.bf16.mxu1 %v1673_v14  ;;  %v92_v23 = vld [vmem:[%s1972_s2] sm:$0xff]   ;;  %v1553_v31 = vld [vmem:[%s1974_s4 + $0x8] ss:$0 sps:$4 sm:$0xff]   ;;  %s1675_s8 = smov 16   ;;  %s1676_s9 = smov 8   ;;  %vm180_vm3 = vcmask 195584   ;;  %v90_v54 = vunpack.c.l.bf16 %v1731_v13  ;;  %v91_v55 = vunpack.c.h.bf16 %v1731_v13 }
  0x12   :  { %1400 = vmatpush3.bf16.msra.mxu0 %v1731_v13  ;;  %1401 = vmatprep.mubr.msk.bf16.mxu0 %vm1674_vm1, %v1673_v14  ;;  %v186_v32 = vsel %vm184_vm2, %v1553_v31, 0  ;;  %v1555_v33 = vld [vmem:[%s1974_s4] sm:$0xff]   ;;  %v94_v44 = vunpack.c.l.bf16 %v92_v23  ;;  %v95_v45 = vunpack.c.h.bf16 %v92_v23  ;;  %v1554_v46 = vld [vmem:[%s1974_s4 + $0x2c] ss:$0 sps:$4 sm:$0xff]   ;;  %vm304_vm4 = vcmask 64512   ;;  %s1677_s29 = smov 32  }
  0x13   :  { %v48_v12 = vmax.f32 %v43_v11, 1.0  ;;  %1413 = vmatprep.subr.bf16.mxu0 %v1673_v14  ;;  %1409 = vmatprep.mubr.msk.bf16.mxu1 %vm1674_vm1, %v1673_v14  ;;  %v326_v52 = vsel %vm184_vm2, %v1554_v46, 0  ;;  %v1556_v56 = vld [vmem:[%s1974_s4 + $0x24] sm:$0xff]   ;;  %v1786_v0 = vshrl.u32 %v167_v63, 7  ;;  %vm233_vm5 = vcmask 261120   ;;  %s1679_s28 = smov [#allocation4]  }
  0x14   :  { %1406 = vmatpush3.bf16.msra.mxu1 %v186_v32  ;;  %vm488_vm6 = vcmask 523264  }
  0x15   :  { %1575 = vrcp.f32 %v48_v12  ;;  %1407 = vmatprep.subr.bf16.mxu1 %v1673_v14  ;;  %v1792_v3 = vsub.s32 0, %v1786_v0 }
  0x18   :  { %1408 = vmatpush3.bf16.msra.mxu1 %v1555_v33 }
  0x19   :  { %1419 = vmatprep.subr.bf16.mxu1 %v1673_v14 }
  0x22   :  { %v1576_v15 = vpop.eup %1575 }
  0x23   :  { %v53_v16 = vmul.f32 %v1576_v15, %v1355_v1  ;;  %v54_v17 = vmul.f32 %v1576_v15, %v1356_v2 }
  0x25   :  { %55 = vxpose.xlu1.b32.start [1/2] (short) (narrow) %v53_v16, 16 }
  0x29   :  { %56 = vxpose.xlu1.b32.end [2/2] (short) (narrow) %v54_v17, 16 }
  0x8e   :  { %v33_v18 = vpop.xlane.xlu0 %32 }
  0x8f   :  { %v44_v19 = vmax.f32 %v33_v18, 1.0 }
  0x91   :  { %1577 = vrcp.f32 %v44_v19 }
  0x92   :  { %v36_v20 = vpop.xlane.xlu0 %35 }
  0x93   :  { %v45_v21 = vmax.f32 %v36_v20, 1.0 }
  0x95   :  { %1579 = vrcp.f32 %v45_v21 }
  0x9e   :  { %v1578_v22 = vpop.eup %1577 }
  0x9f   :  { %v50_v25 = vmul.f32 %v1578_v22, %v1355_v1  ;;  %v99_v1 = vld [vmem:[%s1974_s4 + $0xc] ss:$36 sps:$4 sm:$0xff]  }
  0xa0   :  { %v308_v5 = vunpack.c.h.bf16 %v99_v1 }
  0xa1   :  { %v71_v27 = vpop.trf.xlu1 }
  0xa2   :  { %v1580_v24 = vpop.eup %1579  ;;  %v312_v9 = vrot.slane %v308_v5, %v1792_v3 }
  0xa3   :  { %v51_v26 = vmul.f32 %v1580_v24, %v1356_v2  ;;  %v166_v2 = vunpack.c.l.bf16 %v99_v1 }
  0xa5   :  { %v1744_v28 = vpack.c.bf16 %v51_v26, %v50_v25  ;;  %v72_v29 = vpop.trf.xlu1  ;;  %v170_v7 = vrot.slane %v166_v2, %v1792_v3 }
  0xa6   :  { %v1751_v30 = vpack.c.bf16 %v72_v29, %v71_v27 }
  0xa7   :  { %1402 = vmatmul.mubr.msk.bf16.vlgmr.msra.gmra.mxu0 %vm30_vm0, %v1744_v28 }
  0xa8   :  { %1414 = vmatpush3.bf16.msra.mxu0 %v92_v23  ;;  %1415 = vmatprep.mubr.msk.bf16.mxu0 %vm1674_vm1, %v1673_v14 }
  0xa9   :  { %1427 = vmatprep.subr.bf16.mxu0 %v1673_v14 }
  0xaf   :  { %1416 = vmatmul.mubr.msk.bf16.vlgmr.msra.gmra.mxu0 %vm30_vm0, %v1751_v30 }
  0xb0   :  { %1429 = vmatprep.mubr.msk.bf16.mxu0 %vm1674_vm1, %v1673_v14 }
 0x167   :  { %v148_v34 = vpop.f32.mrf.mxu0 }
 0x169   :  { %v1403_v35 = vpop.f32.mrf.mxu0 }
 0x16b   :  { %v151_v36 = vpop.f32.mrf.mxu0 }
 0x16c   :  { %v1521_v37 = vpack.i.bf16 %v151_v36, %v148_v34 }
 0x16d   :  { %v1404_v38 = vpop.f32.mrf.mxu0 }
 0x16e   :  { %1522 = vrot.lane.b32.xlu0 %v1521_v37, %s1675_s8 }
 0x16f   :  { %v289_v39 = vpop.f32.mrf.mxu0 }
 0x171   :  { %v1417_v40 = vpop.f32.mrf.mxu0 }
 0x173   :  { %v292_v41 = vpop.f32.mrf.mxu0 }
 0x174   :  { %v1526_v42 = vpack.i.bf16 %v292_v41, %v289_v39 }
 0x175   :  { %v1418_v43 = vpop.f32.mrf.mxu0 }
 0x176   :  { %1527 = vrot.lane.b32.xlu1 %v1526_v42, %s1676_s9 }
 0x1e0   :  { %v1523_v47 = vpop.permute.xlu0 %1522 }
 0x1e1   :  { %v1525_v48 = vunpack.i.h.bf16 %v1523_v47  ;;  %v1524_v49 = vunpack.i.l.bf16 %v1523_v47 }
 0x1e3   :  { %v164_v50 = vsel %vm30_vm0, %v95_v45, %v1525_v48  ;;  %v163_v51 = vsel %vm30_vm0, %v94_v44, %v1524_v49 }
 0x1e4   :  { %v165_v53 = vpack.c.bf16 %v164_v50, %v163_v51 }
 0x1e6   :  { %1410 = vmatmul.mubr.msk.bf16.vlgmr.msra.gmra.mxu1 %vm180_vm3, %v165_v53  ;;  %v1560_v53 = vld [vmem:[%s1974_s4 + $0x84] sm:$0xff]  }
 0x1e7   :  { %1420 = vmatpush3.bf16.msra.mxu1 %v326_v52  ;;  %1423 = vmatprep.mubr.msk.bf16.mxu1 %vm1674_vm1, %v1673_v14  ;;  %v1557_v52 = vld [vmem:[%s1974_s4 + $0x60] sm:$0xff]  }
 0x1e8   :  { %v1528_v57 = vpop.permute.xlu1 %1527  ;;  %1421 = vmatprep.subr.bf16.mxu1 %v1673_v14 }
 0x1e9   :  { %v1530_v58 = vunpack.i.h.bf16 %v1528_v57  ;;  %v1529_v59 = vunpack.i.l.bf16 %v1528_v57  ;;  %v1562_v57 = vld [vmem:[%s1974_s4 + $0x7c] sm:$0xff]  }
 0x1eb   :  { %v306_v60 = vsel %vm304_vm4, %v91_v55, %v1530_v58  ;;  %v305_v61 = vsel %vm304_vm4, %v90_v54, %v1529_v59  ;;  %1422 = vmatpush3.bf16.msra.mxu1 %v1556_v56  ;;  %v1558_v54 = vld [vmem:[%s1974_s4 + $0x58] sm:$0xff]   ;;  %v1559_v55 = vld [vmem:[%s1974_s4 + $0x50] sm:$0xff]   ;;  %v1561_v56 = vld [vmem:[%s1974_s4 + $0x48] sm:$0xff]  }
 0x1ec   :  { %v307_v62 = vpack.c.bf16 %v306_v60, %v305_v61  ;;  %1433 = vmatprep.subr.bf16.mxu1 %v1673_v14  ;;  %v1563_v58 = vld [vmem:[%s1974_s4 + $0x74] sm:$0xff]   ;;  %v1564_v61 = vld [vmem:[%s1974_s4 + $0x6c] sm:$0xff]  }
 0x1ee   :  { %1424 = vmatmul.mubr.msk.bf16.vlgmr.msra.gmra.mxu1 %vm180_vm3, %v307_v62 }
 0x1ef   :  { %1441 = vmatprep.mubr.msk.bf16.mxu1 %vm1674_vm1, %v1673_v14  ;;  %1434 = vmatpush3.bf16.msra.mxu1 %v1557_v52 }
 0x1f0   :  { %1435 = vmatprep.subr.bf16.mxu1 %v1673_v14 }
 0x1f3   :  { %1436 = vmatpush3.bf16.msra.mxu1 %v1558_v54 }
 0x1f4   :  { %1437 = vmatprep.subr.bf16.mxu1 %v1673_v14 }
 0x1f7   :  { %1438 = vmatpush3.bf16.msra.mxu1 %v1559_v55 }
 0x1f8   :  { %1439 = vmatprep.subr.bf16.mxu1 %v1673_v14 }
 0x1fb   :  { %1440 = vmatpush3.bf16.msra.mxu1 %v1561_v56 }
 0x1fc   :  { %1463 = vmatprep.subr.bf16.mxu1 %v1673_v14 }
 0x2a6   :  { %v222_v4 = vpop.f32.mrf.mxu1 }
 0x2a7   :  { %v223_v11 = vadd.f32 %v222_v4, %v170_v7 }
 0x2a8   :  { %v1411_v6 = vpop.f32.mrf.mxu1 }
 0x2a9   :  { %v229_v16 = vmax.f32 %v223_v11, 0.0 }
 0x2aa   :  { %v225_v8 = vpop.f32.mrf.mxu1 }
 0x2ab   :  { %v226_v17 = vadd.f32 %v225_v8, %v170_v7  ;;  %v231_v26 = vmul.f32 %v229_v16, %v229_v16 }
 0x2ac   :  { %v1412_v10 = vpop.f32.mrf.mxu1 }
 0x2ad   :  { %v230_v23 = vmax.f32 %v226_v17, 0.0  ;;  %v234_v29 = vsel %vm233_vm5, %v231_v26, 0.0 }
 0x2ae   :  { %v362_v12 = vpop.f32.mrf.mxu1 }
 0x2af   :  { %v363_v13 = vadd.f32 %v362_v12, %v312_v9  ;;  %v232_v32 = vmul.f32 %v230_v23, %v230_v23 }
 0x2b0   :  { %v1425_v15 = vpop.f32.mrf.mxu1 }
 0x2b1   :  { %v369_v18 = vmax.f32 %v363_v13, 0.0  ;;  %v237_v33 = vsel %vm233_vm5, %v232_v32, 0.0 }
 0x2b2   :  { %v365_v19 = vpop.f32.mrf.mxu1 }
 0x2b3   :  { %v366_v20 = vadd.f32 %v365_v19, %v312_v9  ;;  %v371_v21 = vmul.f32 %v369_v18, %v369_v18 }
 0x2b4   :  { %v1426_v22 = vpop.f32.mrf.mxu1 }
 0x2b5   :  { %v370_v24 = vmax.f32 %v366_v20, 0.0  ;;  %v373_v25 = vsel %vm233_vm5, %v371_v21, 0.0  ;;  %v1289_v21 = vld [vmem:[%s1974_s4 + $0x68] ss:$36 sps:$4 sm:$0xff]  }
 0x2b6   :  { %374 = vadd.xlane.f32.xlu0 %v373_v25  ;;  %v459_v22 = vunpack.c.l.bf16 %v1289_v21  ;;  %v601_v26 = vunpack.c.h.bf16 %v1289_v21 }
 0x2b7   :  { %v372_v27 = vmul.f32 %v370_v24, %v370_v24 }
 0x2b9   :  { %v376_v31 = vsel %vm233_vm5, %v372_v27, 0.0 }
 0x2ba   :  { %235 = vadd.xlane.f32.xlu0 %v234_v29  ;;  %377 = vadd.xlane.f32.xlu1 %v376_v31 }
 0x2be   :  { %238 = vadd.xlane.f32.xlu0 %v237_v33 }
 0x33f   :  { %v375_v34 = vpop.xlane.xlu0 %374 }
 0x340   :  { %v379_v35 = vmax.f32 %v375_v34, 1e-24  ;;  %v605_v34 = vrot.slane %v601_v26, %v1792_v3 }
 0x342   :  { %1581 = vrsqrt.f32 %v379_v35 }
 0x343   :  { %v236_v36 = vpop.xlane.xlu0 %235  ;;  %v378_v37 = vpop.xlane.xlu1 %377 }
 0x344   :  { %v240_v38 = vmax.f32 %v236_v36, 1e-24  ;;  %v380_v39 = vmax.f32 %v378_v37, 1e-24 }
 0x346   :  { %1583 = vrsqrt.f32 %v380_v39 }
 0x347   :  { %v239_v40 = vpop.xlane.xlu0 %238  ;;  %1585 = vrsqrt.f32 %v240_v38 }
 0x348   :  { %v241_v41 = vmax.f32 %v239_v40, 1e-24 }
 0x34a   :  { %1587 = vrsqrt.f32 %v241_v41 }
 0x34f   :  { %v1582_v42 = vpop.eup %1581 }
 0x350   :  { %v1800_v45 = vmul.f32 %v1582_v42, %v369_v18 }
 0x353   :  { %v1584_v43 = vpop.eup %1583 }
 0x354   :  { %v1586_v44 = vpop.eup %1585  ;;  %v1802_v46 = vmul.f32 %v1584_v43, %v370_v24 }
 0x355   :  { %v244_v49 = vmul.f32 %v1586_v44, %v229_v16 }
 0x356   :  { %v385_v48 = vpack.c.bf16 %v1802_v46, %v1800_v45 }
 0x357   :  { %v1588_v47 = vpop.eup %1587 }
 0x358   :  { %v245_v50 = vmul.f32 %v1588_v47, %v230_v23  ;;  %1428 = vmatpush3.bf16.msra.mxu0 %v385_v48  ;;  %v463_v23 = vrot.slane %v459_v22, %v1792_v3 }
 0x359   :  { %1445 = vmatprep.subr.bf16.mxu0 %v1673_v14 }
 0x35a   :  { %v386_v51 = vpack.c.bf16 %v245_v50, %v244_v49 }
 0x35b   :  { %1430 = vmatmul.mubr.msk.bf16.vlgmr.msra.gmra.mxu0 %vm30_vm0, %v1744_v28 }
 0x35c   :  { %1446 = vmatpush3.bf16.msra.mxu0 %v386_v51  ;;  %1447 = vmatprep.mubr.msk.bf16.mxu0 %vm1674_vm1, %v1673_v14 }
 0x35d   :  { %1451 = vmatprep.subr.bf16.mxu0 %v1673_v14 }
 0x363   :  { %1448 = vmatmul.mubr.msk.bf16.vlgmr.msra.gmra.mxu0 %vm30_vm0, %v1751_v30 }
 0x364   :  { %1459 = vmatprep.mubr.msk.bf16.mxu0 %vm1674_vm1, %v1673_v14  ;;  %1452 = vmatpush3.bf16.msra.mxu0 %v1560_v53 }
 0x365   :  { %1453 = vmatprep.subr.bf16.mxu0 %v1673_v14 }
 0x368   :  { %1454 = vmatpush3.bf16.msra.mxu0 %v1562_v57 }
 0x369   :  { %1455 = vmatprep.subr.bf16.mxu0 %v1673_v14 }
 0x36c   :  { %1456 = vmatpush3.bf16.msra.mxu0 %v1563_v58 }
 0x36d   :  { %1457 = vmatprep.subr.bf16.mxu0 %v1673_v14 }
 0x370   :  { %1458 = vmatpush3.bf16.msra.mxu0 %v1564_v61 }
 0x371   :  { %1481 = vmatprep.subr.bf16.mxu0 %v1673_v14 }
 0x41b   :  { %v441_v59 = vpop.f32.mrf.mxu0 }
 0x41d   :  { %v1431_v60 = vpop.f32.mrf.mxu0 }
 0x41f   :  { %v444_v62 = vpop.f32.mrf.mxu0 }
 0x420   :  { %v1531_v63 = vpack.i.bf16 %v444_v62, %v441_v59 }
 0x421   :  { %v1432_v1 = vpop.f32.mrf.mxu0 }
 0x422   :  { %1532 = vrot.lane.b32.xlu0 %v1531_v63, %s1677_s29 }
 0x423   :  { %v583_v2 = vpop.f32.mrf.mxu0 }
 0x425   :  { %v1449_v4 = vpop.f32.mrf.mxu0 }
 0x427   :  { %v586_v5 = vpop.f32.mrf.mxu0 }
 0x428   :  { %v1536_v6 = vpack.i.bf16 %v586_v5, %v583_v2 }
 0x429   :  { %v1450_v7 = vpop.f32.mrf.mxu0 }
 0x42a   :  { %1537 = vrot.lane.b32.xlu1 %v1536_v6, %s1677_s29 }
 0x494   :  { %v1533_v8 = vpop.permute.xlu0 %1532 }
 0x495   :  { %v1535_v9 = vunpack.i.h.bf16 %v1533_v8  ;;  %v1534_v10 = vunpack.i.l.bf16 %v1533_v8  ;;  %v1565_v8 = vld [vmem:[%s1974_s4 + $0xcc] sm:$0xff]  }
 0x497   :  { %v457_v11 = vsel %vm233_vm5, %v245_v50, %v1535_v9  ;;  %v456_v12 = vsel %vm233_vm5, %v244_v49, %v1534_v10  ;;  %v1566_v9 = vld [vmem:[%s1974_s4 + $0xc4] sm:$0xff]  }
 0x498   :  { %v458_v13 = vpack.c.bf16 %v457_v11, %v456_v12  ;;  %v1569_v10 = vld [vmem:[%s1974_s4 + $0xa0] sm:$0xff]   ;;  %v1570_v11 = vld [vmem:[%s1974_s4 + $0xb4] sm:$0xff]  }
 0x499   :  { %v1571_v12 = vld [vmem:[%s1974_s4 + $0x98] sm:$0xff]  }
 0x49a   :  { %1442 = vmatmul.mubr.msk.bf16.vlgmr.msra.gmra.mxu1 %vm488_vm6, %v458_v13 }
 0x49b   :  { %1465 = vmatprep.mubr.msk.bf16.mxu1 %vm1674_vm1, %v1673_v14 }
 0x49c   :  { %v1538_v15 = vpop.permute.xlu1 %1537 }
 0x49d   :  { %v1540_v16 = vunpack.i.h.bf16 %v1538_v15  ;;  %v1539_v17 = vunpack.i.l.bf16 %v1538_v15 }
 0x49f   :  { %v599_v18 = vsel %vm233_vm5, %v1802_v46, %v1540_v16  ;;  %v598_v19 = vsel %vm233_vm5, %v1800_v45, %v1539_v17  ;;  %v1572_v16 = vld [vmem:[%s1974_s4 + $0x90] sm:$0xff]  }
 0x4a0   :  { %v600_v20 = vpack.c.bf16 %v599_v18, %v598_v19 }
 0x4a2   :  { %1460 = vmatmul.mubr.msk.bf16.vlgmr.msra.gmra.mxu0 %vm488_vm6, %v600_v20 }
 0x4a3   :  { %1483 = vmatprep.mubr.msk.bf16.mxu0 %vm1674_vm1, %v1673_v14 }
 0x55a   :  { %v526_v24 = vpop.f32.mrf.mxu1 }
 0x55b   :  { %v527_v25 = vadd.f32 %v526_v24, %v463_v23 }
 0x55c   :  { %v1443_v27 = vpop.f32.mrf.mxu1 }
 0x55d   :  { %v533_v29 = vmax.f32 %v527_v25, 0.0 }
 0x55e   :  { %v529_v31 = vpop.f32.mrf.mxu1 }
 0x55f   :  { %v530_v32 = vadd.f32 %v529_v31, %v463_v23  ;;  %v535_v33 = vmul.f32 %v533_v29, %v533_v29 }
 0x560   :  { %v1444_v35 = vpop.f32.mrf.mxu1 }
 0x561   :  { %v534_v36 = vmax.f32 %v530_v32, 0.0  ;;  %v537_v37 = vsel %vm233_vm5, %v535_v33, 0.0 }
 0x562   :  { %538 = vadd.xlane.f32.xlu0 %v537_v37  ;;  %v667_v38 = vpop.f32.mrf.mxu0 }
 0x563   :  { %v668_v39 = vadd.f32 %v667_v38, %v605_v34  ;;  %v536_v40 = vmul.f32 %v534_v36, %v534_v36 }
 0x564   :  { %v1461_v41 = vpop.f32.mrf.mxu0 }
 0x565   :  { %v674_v42 = vmax.f32 %v668_v39, 0.0  ;;  %v540_v43 = vsel %vm233_vm5, %v536_v40, 0.0  ;;  %v1328_v39 = vld [vmem:[%s1974_s4 + $0xb0] ss:$36 sps:$4 sm:$0xff]  }
 0x566   :  { %541 = vadd.xlane.f32.xlu1 %v540_v43  ;;  %v670_v44 = vpop.f32.mrf.mxu0  ;;  %v905_v40 = vunpack.c.h.bf16 %v1328_v39 }
 0x567   :  { %v671_v45 = vadd.f32 %v670_v44, %v605_v34  ;;  %v676_v46 = vmul.f32 %v674_v42, %v674_v42  ;;  %v764_v44 = vunpack.c.l.bf16 %v1328_v39 }
 0x568   :  { %v1462_v47 = vpop.f32.mrf.mxu0  ;;  %v909_v41 = vrot.slane %v905_v40, %v1792_v3 }
 0x569   :  { %v675_v48 = vmax.f32 %v671_v45, 0.0  ;;  %v678_v49 = vsel %vm233_vm5, %v676_v46, 0.0 }
 0x56a   :  { %679 = vadd.xlane.f32.xlu0 %v678_v49  ;;  %v768_v49 = vrot.slane %v764_v44, %v1792_v3 }
 0x56b   :  { %v677_v50 = vmul.f32 %v675_v48, %v675_v48 }
 0x56d   :  { %v681_v51 = vsel %vm233_vm5, %v677_v50, 0.0 }
 0x56e   :  { %682 = vadd.xlane.f32.xlu0 %v681_v51 }
 0x5eb   :  { %v539_v52 = vpop.xlane.xlu0 %538 }
 0x5ec   :  { %v543_v53 = vmax.f32 %v539_v52, 1e-24 }
 0x5ee   :  { %1589 = vrsqrt.f32 %v543_v53 }
 0x5ef   :  { %v542_v54 = vpop.xlane.xlu1 %541 }
 0x5f0   :  { %v544_v55 = vmax.f32 %v542_v54, 1e-24 }
 0x5f2   :  { %1591 = vrsqrt.f32 %v544_v55 }
 0x5f3   :  { %v680_v56 = vpop.xlane.xlu0 %679 }
 0x5f4   :  { %v684_v57 = vmax.f32 %v680_v56, 1e-24 }
 0x5f6   :  { %1593 = vrsqrt.f32 %v684_v57 }
 0x5f7   :  { %v683_v58 = vpop.xlane.xlu0 %682 }
 0x5f8   :  { %v685_v59 = vmax.f32 %v683_v58, 1e-24 }
 0x5fa   :  { %1595 = vrsqrt.f32 %v685_v59 }
 0x5fb   :  { %v1590_v60 = vpop.eup %1589 }
 0x5fc   :  { %v1871_v62 = vmul.f32 %v1590_v60, %v533_v29 }
 0x5ff   :  { %v1592_v61 = vpop.eup %1591 }
 0x600   :  { %v548_v63 = vmul.f32 %v1592_v61, %v534_v36 }
 0x602   :  { %v691_v1 = vpack.c.bf16 %v548_v63, %v1871_v62 }
 0x603   :  { %v1594_v2 = vpop.eup %1593 }
 0x604   :  { %1482 = vmatpush3.bf16.msra.mxu0 %v691_v1  ;;  %v688_v5 = vmul.f32 %v1594_v2, %v674_v42 }
 0x605   :  { %1487 = vmatprep.subr.bf16.mxu0 %v1673_v14 }
 0x607   :  { %v1596_v4 = vpop.eup %1595  ;;  %1484 = vmatmul.mubr.msk.bf16.vlgmr.msra.gmra.mxu0 %vm30_vm0, %v1751_v30  ;;  %v1567_v30 = vld [vmem:[%s1974_s4 + $0xa8] sm:$0xff]  }
 0x608   :  { %v689_v6 = vmul.f32 %v1596_v4, %v675_v48  ;;  %1495 = vmatprep.mubr.msk.bf16.mxu0 %vm1674_vm1, %v1673_v14  ;;  %1488 = vmatpush3.bf16.msra.mxu0 %v1565_v8 }
 0x609   :  { %1489 = vmatprep.subr.bf16.mxu0 %v1673_v14 }
 0x60a   :  { %v690_v7 = vpack.c.bf16 %v689_v6, %v688_v5 }
 0x60c   :  { %1464 = vmatpush3.bf16.msra.mxu1 %v690_v7  ;;  %1490 = vmatpush3.bf16.msra.mxu0 %v1566_v9 }
 0x60d   :  { %1469 = vmatprep.subr.bf16.mxu1 %v1673_v14  ;;  %1491 = vmatprep.subr.bf16.mxu0 %v1673_v14 }
 0x60f   :  { %1466 = vmatmul.mubr.msk.bf16.vlgmr.msra.gmra.mxu1 %vm30_vm0, %v1744_v28  ;;  %v1568_v28 = vld [vmem:[%s1974_s4 + $0xbc] sm:$0xff]  }
 0x610   :  { %1477 = vmatprep.mubr.msk.bf16.mxu1 %vm1674_vm1, %v1673_v14  ;;  %1470 = vmatpush3.bf16.msra.mxu1 %v1567_v30 }
 0x611   :  { %1471 = vmatprep.subr.bf16.mxu1 %v1673_v14  ;;  %1492 = vmatpush3.bf16.msra.mxu0 %v1568_v28 }
 0x612   :  { %1493 = vmatprep.subr.bf16.mxu0 %v1673_v14 }
 0x614   :  { %1472 = vmatpush3.bf16.msra.mxu1 %v1569_v10 }
 0x615   :  { %1494 = vmatpush3.bf16.msra.mxu0 %v1570_v11  ;;  %1473 = vmatprep.subr.bf16.mxu1 %v1673_v14  ;;  %v1341_v11 = vld [vmem:[%s1973_s3] ss:$0 sm:$0xff] }
 0x616   :  { %vm1007_vm7 = vcmp.eq.s32.totalorder %v1786_v0, %v1341_v11 }
 0x618   :  { %1474 = vmatpush3.bf16.msra.mxu1 %v1571_v12  ;;  %v1002_v12 = vadd.s32 8, %v1786_v0 }
 0x619   :  { %1475 = vmatprep.subr.bf16.mxu1 %v1673_v14 }
 0x61a   :  { %vm1008_vm8 = vcmp.eq.s32.totalorder %v1002_v12, %v1341_v11 }
 0x61b   :  { %vm1347_vm9 = vmpackc.low %vm1008_vm8, %vm1007_vm7 }
 0x61c   :  { %1476 = vmatpush3.bf16.msra.mxu1 %v1572_v16  ;;  %v1678_v16 = vmov 1.0|1.0  }
 0x61d   :  { %1499 = vmatprep.subr.bf16.mxu1 %v1673_v14 }
 0x6c7   :  { %v887_v13 = vpop.f32.mrf.mxu0 }
 0x6c9   :  { %v1485_v15 = vpop.f32.mrf.mxu0 }
 0x6cb   :  { %v890_v17 = vpop.f32.mrf.mxu0 }
 0x6cc   :  { %v1541_v18 = vpack.i.bf16 %v890_v17, %v887_v13 }
 0x6cd   :  { %v1486_v19 = vpop.f32.mrf.mxu0 }
 0x6ce   :  { %1542 = vrot.lane.b32.xlu1 %v1541_v18, %s1677_s29 }
 0x6cf   :  { %v746_v20 = vpop.f32.mrf.mxu1 }
 0x6d1   :  { %v1467_v21 = vpop.f32.mrf.mxu1 }
 0x6d3   :  { %v749_v22 = vpop.f32.mrf.mxu1 }
 0x6d4   :  { %v1546_v23 = vpack.i.bf16 %v749_v22, %v746_v20 }
 0x6d5   :  { %v1468_v24 = vpop.f32.mrf.mxu1 }
 0x6d6   :  { %1547 = vrot.lane.b32.xlu0 %v1546_v23, %s1677_s29  ;;  %v1344_v23 = vld [vmem:[%s1973_s3 + $0x1] ss:$0 sm:$0xff]  ;;  %s1239_s3 = sshll.u32 %s1679_s28, 4  ;;  %s1680_s29 = smov [#allocation2]   ;;  %s1240_s3 = int_to_ptr.vmem [resolvable:$true] %s1239_s3 }
 0x6d7   :  { %vm1018_vm10 = vcmp.eq.s32.totalorder %v1786_v0, %v1344_v23  ;;  %vm1019_vm11 = vcmp.eq.s32.totalorder %v1002_v12, %v1344_v23  ;;  %s1227_s30 = sshll.u32 %s1680_s29, 4  ;;  %s1609_s8 = scalar_lea.vmem %s1240_s3, 256  ;;  %s1228_s30 = int_to_ptr.vmem [resolvable:$true] %s1227_s30 }
 0x6d8   :  { %vm1350_vm12 = vmpackc.low %vm1019_vm11, %vm1018_vm10  ;;  %p1610_p0 = scmp.ne.s32.totalorder %s1240_s3, %s1609_s8  ;;  %p1614_p1 = scmp.lt.s32.totalorder %s1240_s3, %s1240_s3 }
 0x6d9   :  { %p1615_p2 = scmp.lt.s32.totalorder %s1609_s8, %s1609_s8 }
 0x6db   :  { %p1616_p3 = por %p1615_p2, %p1614_p1 }
 0x6dd   :  { %p1617_p4 = pnand %p1616_p3, %p1610_p0 }
 0x740   :  { %v1543_v25 = vpop.permute.xlu1 %1542 }
 0x741   :  { %v1545_v26 = vunpack.i.h.bf16 %v1543_v25  ;;  %v1544_v27 = vunpack.i.l.bf16 %v1543_v25 }
 0x743   :  { %v903_v29 = vsel %vm233_vm5, %v689_v6, %v1545_v26  ;;  %v902_v31 = vsel %vm233_vm5, %v688_v5, %v1544_v27 }
 0x744   :  { %v904_v32 = vpack.c.bf16 %v903_v29, %v902_v31 }
 0x746   :  { %1496 = vmatmul.mubr.msk.bf16.vlgmr.msra.gmra.mxu0 %vm488_vm6, %v904_v32 }
 0x748   :  { %v1548_v33 = vpop.permute.xlu0 %1547 }
 0x749   :  { %v1550_v34 = vunpack.i.h.bf16 %v1548_v33  ;;  %v1549_v35 = vunpack.i.l.bf16 %v1548_v33 }
 0x74b   :  { %v762_v36 = vsel %vm233_vm5, %v548_v63, %v1550_v34  ;;  %v761_v37 = vsel %vm233_vm5, %v1871_v62, %v1549_v35 }
 0x74c   :  { %v763_v38 = vpack.c.bf16 %v762_v36, %v761_v37 }
 0x74e   :  { %1478 = vmatmul.mubr.msk.bf16.vlgmr.msra.gmra.mxu1 %vm488_vm6, %v763_v38 }
 0x74f   :  { %1501 = vmatprep.mubr.msk.bf16.mxu1 %vm1674_vm1, %v1673_v14  ;;  %1500 = vmatpush3.bf16.msk.msra.mxu1 %vm1347_vm9, %v1678_v16 }
 0x750   :  { %1505 = vmatprep.subr.bf16.mxu1 %v1673_v14 }
 0x806   :  { %v971_v42 = vpop.f32.mrf.mxu0 }
 0x807   :  { %v972_v43 = vadd.f32 %v971_v42, %v909_v41 }
 0x808   :  { %v1497_v45 = vpop.f32.mrf.mxu0 }
 0x809   :  { %v978_v46 = vmax.f32 %v972_v43, 0.0 }
 0x80a   :  { %v974_v47 = vpop.f32.mrf.mxu0 }
 0x80b   :  { %v975_v48 = vadd.f32 %v974_v47, %v909_v41  ;;  %v980_v50 = vmul.f32 %v978_v46, %v978_v46 }
 0x80c   :  { %v1498_v51 = vpop.f32.mrf.mxu0 }
 0x80d   :  { %v979_v52 = vmax.f32 %v975_v48, 0.0  ;;  %v982_v53 = vsel %vm30_vm0, %v980_v50, 0.0 }
 0x80e   :  { %v830_v54 = vpop.f32.mrf.mxu1  ;;  %983 = vadd.xlane.f32.xlu1 %v982_v53 }
 0x80f   :  { %v831_v55 = vadd.f32 %v830_v54, %v768_v49  ;;  %v981_v56 = vmul.f32 %v979_v52, %v979_v52 }
 0x810   :  { %v1479_v57 = vpop.f32.mrf.mxu1 }
 0x811   :  { %v837_v58 = vmax.f32 %v831_v55, 0.0  ;;  %v985_v59 = vsel %vm30_vm0, %v981_v56, 0.0 }
 0x812   :  { %v833_v60 = vpop.f32.mrf.mxu1  ;;  %986 = vadd.xlane.f32.xlu0 %v985_v59 }
 0x813   :  { %v834_v61 = vadd.f32 %v833_v60, %v768_v49  ;;  %v839_v62 = vmul.f32 %v837_v58, %v837_v58 }
 0x814   :  { %v1480_v63 = vpop.f32.mrf.mxu1 }
 0x815   :  { %v838_v1 = vmax.f32 %v834_v61, 0.0  ;;  %v841_v3 = vsel %vm30_vm0, %v839_v62, 0.0 }
 0x816   :  { %842 = vadd.xlane.f32.xlu1 %v841_v3 }
 0x817   :  { %v840_v2 = vmul.f32 %v838_v1, %v838_v1 }
 0x819   :  { %v844_v4 = vsel %vm30_vm0, %v840_v2, 0.0 }
 0x81a   :  { %845 = vadd.xlane.f32.xlu0 %v844_v4 }
 0x897   :  { %v984_v5 = vpop.xlane.xlu1 %983 }
 0x898   :  { %v988_v6 = vmax.f32 %v984_v5, 1e-24 }
 0x89a   :  { %1597 = vrsqrt.f32 %v988_v6 }
 0x89b   :  { %v987_v7 = vpop.xlane.xlu0 %986 }
 0x89c   :  { %v989_v8 = vmax.f32 %v987_v7, 1e-24 }
 0x89e   :  { %1599 = vrsqrt.f32 %v989_v8 }
 0x89f   :  { %v843_v30 = vpop.xlane.xlu1 %842 }
 0x8a0   :  { %v847_v9 = vmax.f32 %v843_v30, 1e-24 }
 0x8a2   :  { %1601 = vrsqrt.f32 %v847_v9 }
 0x8a3   :  { %v846_v28 = vpop.xlane.xlu0 %845 }
 0x8a4   :  { %v848_v10 = vmax.f32 %v846_v28, 1e-24 }
 0x8a6   :  { %1603 = vrsqrt.f32 %v848_v10 }
 0x8a7   :  { %v1598_v13 = vpop.eup %1597 }
 0x8a8   :  { %v992_v15 = vmul.f32 %v1598_v13, %v978_v46 }
 0x8aa   :  { %1025 = vxpose.xlu1.b32.start [1/2] (short) (narrow) %v992_v15, 16  ;;  %994 = vst.msk [vmem:[#allocation2] sm:$0xff] %vm30_vm0, %v992_v15 }
 0x8ab   :  { %v1600_v17 = vpop.eup %1599 }
 0x8ac   :  { %v993_v18 = vmul.f32 %v1600_v17, %v979_v52 }
 0x8ae   :  { %1026 = vxpose.xlu1.b32.end [2/2] (short) (narrow) %v993_v18, 16  ;;  %995 = vst.msk [vmem:[#allocation2 + $0x8] sm:$0xff] %vm30_vm0, %v993_v18 }
 0x8af   :  { %v1602_v19 = vpop.eup %1601 }
 0x8b0   :  { %v851_v20 = vmul.f32 %v1602_v19, %v837_v58 }
 0x8b2   :  { %996 = vst.msk [vmem:[#allocation4] sm:$0xff] %vm30_vm0, %v851_v20  ;;  %1102 = vxpose.xlu0.b32.start [1/2] (short) (narrow) %v851_v20, 16 }
 0x8b3   :  { %v1604_v21 = vpop.eup %1603 }
 0x8b4   :  { %v852_v22 = vmul.f32 %v1604_v21, %v838_v1 }
 0x8b6   :  { %1103 = vxpose.xlu0.b32.end [2/2] (short) (narrow) %v852_v22, 16  ;;  %997 = vst.msk [vmem:[#allocation4 + $0x8] sm:$0xff] %vm30_vm0, %v852_v22 }
 0x926   :  { %v1041_v24 = vpop.trf.xlu1 }
 0x92a   :  { %v1042_v25 = vpop.trf.xlu1 }
 0x92b   :  { %v1057_v26 = vpack.c.bf16 %v1042_v25, %v1041_v24 }
 0x92d   :  { %1502 = vmatmul.mubr.msk.bf16.vlgmr.msra.gmra.mxu1 %vm30_vm0, %v1057_v26 }
 0x92e   :  { %v1118_v27 = vpop.trf.xlu0  ;;  %1506 = vmatpush3.bf16.msk.msra.mxu1 %vm1350_vm12, %v1678_v16  ;;  %1507 = vmatprep.mubr.msk.bf16.mxu1 %vm1674_vm1, %v1673_v14 }
 0x932   :  { %v1119_v29 = vpop.trf.xlu0 }
 0x933   :  { %v1134_v31 = vpack.c.bf16 %v1119_v29, %v1118_v27 }
 0x935   :  { %1508 = vmatmul.mubr.msk.bf16.vlgmr.msra.gmra.mxu1 %vm30_vm0, %v1134_v31 }
 0x936   :  { %1620 = shalt.err (!%p1617_p4)
}
 0x937   :  { %s1681_s10 = smov 128   ;;  %s1629_s13 = scalar_lea.vmem %s1228_s30, 256 }
 0x938   :  { %1245 = dma.vmem_to_hbm [thread:$0]  %s1240_s3, 256, %s1976_s6, [#allocation5], %s1681_s10, %s1681_s10, %s1676_s9  }
 0x939   :  { %p1630_p5 = scmp.ne.s32.totalorder %s1228_s30, %s1629_s13  ;;  %p1634_p6 = scmp.lt.s32.totalorder %s1228_s30, %s1228_s30 }
 0x93a   :  { %p1635_p7 = scmp.lt.s32.totalorder %s1629_s13, %s1629_s13 }
 0x93c   :  { %p1636_p8 = por %p1635_p7, %p1634_p6 }
 0x93e   :  { %p1637_p9 = pnand %p1636_p8, %p1630_p5 }
 0x940   :  { %1640 = shalt.err (!%p1637_p9)
}
 0x941   :  { %1233 = dma.vmem_to_hbm [thread:$0]  %s1228_s30, 256, %s1975_s5, [#allocation3], %s1681_s10, %s1681_s10, %s1676_s9   ;;  %vm1220_vm13 = vcmask 516096  }
 0x942   :  { %s1682_s5 = smov [#allocation6]  }
 0x943   :  { %s1252_s6 = sshll.u32 %s1682_s5, 4  ;;  %s1253_s6 = int_to_ptr.vmem [resolvable:$true] %s1252_s6 }
 0x944   :  { %s1649_s9 = scalar_lea.vmem %s1253_s6, 16  ;;  %s1653_s16 = scalar_lea.vmem %s1253_s6, 32 }
 0x945   :  { %p1650_p10 = scmp.ne.s32.totalorder %s1253_s6, %s1649_s9  ;;  %p1654_p11 = scmp.lt.s32.totalorder %s1253_s6, %s1253_s6 }
 0x946   :  { %p1655_p12 = scmp.lt.s32.totalorder %s1653_s16, %s1649_s9 }
 0x948   :  { %p1656_p13 = por %p1655_p12, %p1654_p11 }
 0x94a   :  { %p1657_p0 = pnand %p1656_p13, %p1650_p10 }
 0x9ed   :  { %v1095_v14 = vpop.f32.mrf.mxu1 }
 0x9ee   :  { %v1179_v32 = vmul.f32 %v1095_v14, %v1095_v14 }
 0x9ef   :  { %v1503_v0 = vpop.f32.mrf.mxu1 }
 0x9f0   :  { %v1181_v36 = vsel %vm488_vm6, %v1179_v32, 0.0 }
 0x9f1   :  { %v1098_v33 = vpop.f32.mrf.mxu1 }
 0x9f2   :  { %v1180_v34 = vmul.f32 %v1098_v33, %v1098_v33 }
 0x9f3   :  { %v1504_v35 = vpop.f32.mrf.mxu1 }
 0x9f4   :  { %v1182_v37 = vsel %vm488_vm6, %v1180_v34, 0.0 }
 0x9f5   :  { %v1183_v38 = vadd.f32 %v1182_v37, %v1181_v36  ;;  %v1172_v39 = vpop.f32.mrf.mxu1 }
 0x9f6   :  { %v1194_v42 = vmul.f32 %v1172_v39, %v1172_v39 }
 0x9f7   :  { %v1184_v40 = vrot.slane %v1183_v38, 4  ;;  %v1509_v41 = vpop.f32.mrf.mxu1 }
 0x9f8   :  { %v1196_v48 = vsel %vm488_vm6, %v1194_v42, 0.0 }
 0x9f9   :  { %v1185_v43 = vadd.f32 %v1184_v40, %v1183_v38  ;;  %v1175_v44 = vpop.f32.mrf.mxu1 }
 0x9fa   :  { %v1195_v45 = vmul.f32 %v1175_v44, %v1175_v44 }
 0x9fb   :  { %v1186_v46 = vrot.slane %v1185_v43, 2  ;;  %v1510_v47 = vpop.f32.mrf.mxu1 }
 0x9fc   :  { %v1197_v49 = vsel %vm488_vm6, %v1195_v45, 0.0 }
 0x9fd   :  { %v1187_v50 = vadd.f32 %v1186_v46, %v1185_v43  ;;  %v1198_v51 = vadd.f32 %v1197_v49, %v1196_v48 }
 0x9ff   :  { %v1188_v52 = vrot.slane %v1187_v50, 1  ;;  %v1199_v53 = vrot.slane %v1198_v51, 4 }
 0xa01   :  { %v1200_v54 = vadd.f32 %v1199_v53, %v1198_v51  ;;  %v1189_v55 = vadd.f32 %v1188_v52, %v1187_v50 }
 0xa03   :  { %v1201_v56 = vrot.slane %v1200_v54, 2  ;;  %v1190_v58 = vmax.f32 %v1189_v55, 1e-24 }
 0xa05   :  { %v1202_v57 = vadd.f32 %v1201_v56, %v1200_v54  ;;  %1605 = vrsqrt.f32 %v1190_v58 }
 0xa07   :  { %v1203_v59 = vrot.slane %v1202_v57, 1 }
 0xa09   :  { %v1204_v60 = vadd.f32 %v1203_v59, %v1202_v57 }
 0xa0b   :  { %v1205_v61 = vmax.f32 %v1204_v60, 1e-24 }
 0xa0d   :  { %1607 = vrsqrt.f32 %v1205_v61 }
 0xa12   :  { %v1606_v62 = vpop.eup %1605 }
 0xa13   :  { %v1193_v1 = vmul.f32 %v1606_v62, %v1098_v33  ;;  %v1192_v3 = vmul.f32 %v1606_v62, %v1095_v14 }
 0xa1a   :  { %v1608_v63 = vpop.eup %1607 }
 0xa1b   :  { %v1207_v2 = vmul.f32 %v1608_v63, %v1172_v39  ;;  %v1208_v4 = vmul.f32 %v1608_v63, %v1175_v44 }
 0xa1d   :  { %v1209_v5 = vmul.f32 %v1207_v2, %v1192_v3  ;;  %v1210_v6 = vmul.f32 %v1208_v4, %v1193_v1 }
 0xa1f   :  { %v1211_v7 = vsel %vm488_vm6, %v1209_v5, 0.0  ;;  %v1212_v8 = vsel %vm488_vm6, %v1210_v6, 0.0 }
 0xa20   :  { %v1213_v30 = vadd.f32 %v1212_v8, %v1211_v7 }
 0xa22   :  { %v1214_v9 = vrot.slane %v1213_v30, 4 }
 0xa24   :  { %v1215_v28 = vadd.f32 %v1214_v9, %v1213_v30 }
 0xa26   :  { %v1216_v10 = vrot.slane %v1215_v28, 2 }
 0xa28   :  { %v1217_v11 = vadd.f32 %v1216_v10, %v1215_v28 }
 0xa2a   :  { %v1218_v12 = vrot.slane %v1217_v11, 1 }
 0xa2c   :  { %v1219_v13 = vadd.f32 %v1218_v12, %v1217_v11 }
 0xa2e   :  { %1221 = vst.msk [vmem:[#allocation6] sm:$0x1] %vm1220_vm13, %v1219_v13 }
 0xa2f   :  { %1660 = shalt.err (!%p1657_p0)
}
 0xa30   :  { %1255 = dma.vmem_to_hbm [thread:$0]  %s1253_s6, 16, %s1977_s7, [#allocation5]  }
 0xa31   :  { %1669 = dma.done.wait [#allocation3], 256  }
 0xa32   :  { %1670 = vsyncadd [#allocation3], 4294967040 }
 0xa33   :  { %1671 = dma.done.wait [#allocation5], 272  }
 0xa34   :  { %1672 = vsyncadd [#allocation5], 4294967024 }
 0xa35   :  { %1265 = vsyncpa [#allocation3], 1 }
 0xa36   :  { %1266 = vsyncpa [#allocation5], 1 }

</bundles_post_ra>
